<compile_context>
chip_gen: v6e
topology: v6e:2x2x1
jax: 0.10.0
libtpu: 0.0.40
codegen_flags: <defaults>
</compile_context>

<pallas_src>
import functools

import jax
import jax.numpy as jnp
import numpy as np
from jax import lax
from jax.experimental import pallas as pl
from jax.experimental.pallas import tpu as pltpu

BN_EPS = 1e-5
LANE = 128


def _round_up(x, m):
    return (x + m - 1) // m * m


def _largest_divisor_leq(n, cap):
    cap = max(1, min(n, cap))
    for d in range(cap, 0, -1):
        if n % d == 0:
            return d
    return 1


def _vmem_limit_bytes():
    """Per-generation scoped-VMEM cap (None -> keep the compiler default)."""
    try:
        kind = jax.devices()[0].device_kind.lower()
    except Exception:
        return None
    if "v5" in kind or "v6" in kind:
        return 96 * 1024 * 1024          # 128 MiB physical VMEM parts
    if "v7" in kind or "7x" in kind:
        return 48 * 1024 * 1024          # 64 MiB physical VMEM
    return None


@functools.partial(jax.jit, static_argnames=("kernel_size",))
def conv_block_forward(x_nchw, conv_w, conv_b, gamma, beta, kernel_size=3):
    """x_nchw: (N, Cin, H, W); conv_w: (Cout, Cin, K, K); conv_b/gamma/beta: (Cout,).

    conv_b is accepted for API parity with nn.Conv2d but not applied: with
    training-mode BatchNorm the per-channel constant is exactly cancelled by
    the batch-mean subtraction, so the fused result is unchanged.
    """
    del conv_b
    N, Cin, H, W = x_nchw.shape
    Cout = conv_w.shape[0]
    K = kernel_size
    Ho, Wo = H - K + 1, W - K + 1          # stride=1, padding=0 (VALID)
    M = N * Ho * Wo
    Cout_pad = _round_up(Cout, LANE)       # lane-dense, unmasked stores

    # ---- glue (~1x input bytes): NCHW -> NHWC bf16; weights -> per-tap bf16 ----
    x_nhwc = jnp.transpose(x_nchw, (0, 2, 3, 1)).astype(jnp.bfloat16)
    # (Cout, Cin, K, K) -> (K, K, Cin, Cout) -> (K*K, Cin, Cout_pad), tap = kh*K + kw
    w_taps = jnp.transpose(conv_w, (2, 3, 1, 0)).reshape(K * K, Cin, Cout)
    w_taps = jnp.pad(w_taps.astype(jnp.bfloat16),
                     ((0, 0), (0, 0), (0, Cout_pad - Cout)))

    vmem_limit = _vmem_limit_bytes()

    def _compiler_params(dim_sems):
        kwargs = dict(dimension_semantics=dim_sems)
        if vmem_limit is not None:
            kwargs["vmem_limit_bytes"] = vmem_limit
        return pltpu.CompilerParams(**kwargs)

    # ------------- pass 1: fused im2col conv + per-image BN partials -------------
    def conv_stats_kernel(x_ref, w_ref, y_ref, sum_ref, ssq_ref):
        # x_ref:   (H, W, Cin)        bf16   one image (batch dim squeezed)
        # w_ref:   (K*K, Cin, Cout_pad) bf16 VMEM-resident, single-buffered
        # y_ref:   (Ho, Wo, Cout_pad) bf16   conv output (bf16 intermediate)
        # sum_ref / ssq_ref: (1, Cout_pad) f32  per-image channel partials
        def row_body(ho, carry):
            s, q = carry
            acc = jnp.zeros((Wo, Cout_pad), jnp.float32)
            for kh in range(K):                       # static K*K tap accumulation
                row = x_ref[ho + kh]                  # (W, Cin) bf16
                for kw in range(K):
                    patch = row[kw:kw + Wo, :]        # (Wo, Cin) bf16 shifted window
                    acc = acc + jnp.dot(patch, w_ref[kh * K + kw],
                                        preferred_element_type=jnp.float32)
            # Stats from the f32 accumulator (before the bf16 store).
            s = s + jnp.sum(acc, axis=0, keepdims=True)
            q = q + jnp.sum(acc * acc, axis=0, keepdims=True)
            y_ref[ho] = acc.astype(y_ref.dtype)       # bf16 halves pass-2 HBM traffic
            return s, q

        zeros = jnp.zeros((1, Cout_pad), jnp.float32)
        s, q = lax.fori_loop(0, Ho, row_body, (zeros, zeros))
        sum_ref[...] = s
        ssq_ref[...] = q

    y_conv, img_sum, img_ssq = pl.pallas_call(
        conv_stats_kernel,
        grid=(N,),
        in_specs=[
            pl.BlockSpec((None, H, W, Cin), lambda n: (n, 0, 0, 0)),
            pl.BlockSpec((K * K, Cin, Cout_pad), lambda n: (0, 0, 0),
                         pipeline_mode=pl.Buffered(1)),   # grid-invariant weights
        ],
        out_specs=[
            pl.BlockSpec((None, Ho, Wo, Cout_pad), lambda n: (n, 0, 0, 0)),
            pl.BlockSpec((None, 1, Cout_pad), lambda n: (n, 0, 0)),
            pl.BlockSpec((None, 1, Cout_pad), lambda n: (n, 0, 0)),
        ],
        out_shape=[
            jax.ShapeDtypeStruct((N, Ho, Wo, Cout_pad), jnp.bfloat16),
            jax.ShapeDtypeStruct((N, 1, Cout_pad), jnp.float32),
            jax.ShapeDtypeStruct((N, 1, Cout_pad), jnp.float32),
        ],
        compiler_params=_compiler_params(("parallel",)),
    )(x_nhwc, w_taps)

    # ---- tiny cross-image reduction + BN scale/shift in plain JAX (all f32) ----
    total = jnp.sum(img_sum, axis=(0, 1))        # (Cout_pad,)
    total_sq = jnp.sum(img_ssq, axis=(0, 1))     # (Cout_pad,)
    mean = total / M
    var = jnp.maximum(total_sq / M - mean * mean, 0.0)   # biased var (PyTorch norm)
    gamma_pad = jnp.pad(gamma.astype(jnp.float32), (0, Cout_pad - Cout))
    beta_pad = jnp.pad(beta.astype(jnp.float32), (0, Cout_pad - Cout))
    scale = gamma_pad * lax.rsqrt(var + BN_EPS)
    shift = beta_pad - mean * scale

    # ----------------- pass 2: normalize + affine + ReLU (in place) --------------
    def bn_relu_kernel(y_ref, scale_ref, shift_ref, o_ref):
        y = y_ref[...].astype(jnp.float32)                  # BN math stays f32
        out = y * scale_ref[...] + shift_ref[...]
        o_ref[...] = jnp.maximum(out, 0.0).astype(o_ref.dtype)

    # Decoupled pass-2 row-block: as many output rows per step as a modest VMEM
    # budget allows (in + out blocks, double-buffered).
    bytes_per_row = Wo * Cout_pad * 2                       # bf16
    row_cap = max(1, (32 * 1024 * 1024) // (4 * bytes_per_row))
    tho = _largest_divisor_leq(Ho, row_cap)
    n_hblk = Ho // tho

    out_nhwc = pl.pallas_call(
        bn_relu_kernel,
        grid=(N, n_hblk),
        in_specs=[
            pl.BlockSpec((None, tho, Wo, Cout_pad), lambda n, h: (n, h, 0, 0)),
            pl.BlockSpec((1, 1, Cout_pad), lambda n, h: (0, 0, 0),
                         pipeline_mode=pl.Buffered(1)),     # resident scale
            pl.BlockSpec((1, 1, Cout_pad), lambda n, h: (0, 0, 0),
                         pipeline_mode=pl.Buffered(1)),     # resident shift
        ],
        out_specs=pl.BlockSpec((None, tho, Wo, Cout_pad), lambda n, h: (n, h, 0, 0)),
        out_shape=jax.ShapeDtypeStruct((N, Ho, Wo, Cout_pad), jnp.bfloat16),
        input_output_aliases={0: 0},                        # write in place over y_conv
        compiler_params=_compiler_params(("parallel", "parallel")),
    )(y_conv, scale.reshape(1, 1, Cout_pad), shift.reshape(1, 1, Cout_pad))

    # ---- glue: strip channel padding, back to f32 NCHW (module semantics) ----
    out = out_nhwc[:, :, :, :Cout].astype(jnp.float32)
    return jnp.transpose(out, (0, 3, 1, 2))


def reference_forward(x_nchw, conv_w, conv_b, gamma, beta):
    # PyTorch semantics (conv+bias -> train-mode BN -> ReLU) with the same bf16
    # matmul operands / f32 accumulation as the kernel.
    y = lax.conv_general_dilated(
        x_nchw.astype(jnp.bfloat16), conv_w.astype(jnp.bfloat16),
        window_strides=(1, 1), padding="VALID",
        dimension_numbers=("NCHW", "OIHW", "NCHW"),
        preferred_element_type=jnp.float32,
    ) + conv_b[None, :, None, None]
    mean = jnp.mean(y, axis=(0, 2, 3), keepdims=True)
    var = jnp.mean((y - mean) ** 2, axis=(0, 2, 3), keepdims=True)
    y = (y - mean) * lax.rsqrt(var + BN_EPS)
    y = y * gamma[None, :, None, None] + beta[None, :, None, None]
    return jnp.maximum(y, 0.0)


if __name__ == "__main__":
    key = jax.random.PRNGKey(0)
    N, Cin, H, W = 2, 4, 16, 16
    Cout, K = 8, 3

    kx, kw, kb = jax.random.split(key, 3)
    x = jax.random.normal(kx, (N, Cin, H, W), dtype=jnp.float32)
    # Conv2d params (deterministic kaiming-uniform-like init)
    fan_in = Cin * K * K
    bound = 1.0 / np.sqrt(fan_in)
    conv_w = jax.random.uniform(kw, (Cout, Cin, K, K), jnp.float32, -bound, bound)
    conv_b = jax.random.uniform(kb, (Cout,), jnp.float32, -bound, bound)
    # BatchNorm2d default init: weight=1, bias=0
    gamma = jnp.ones((Cout,), jnp.float32)
    beta = jnp.zeros((Cout,), jnp.float32)

    out = conv_block_forward(x, conv_w, conv_b, gamma, beta, kernel_size=K)
    out = jax.block_until_ready(out)

    ref = jax.block_until_ready(reference_forward(x, conv_w, conv_b, gamma, beta))
    assert out.shape == (N, Cout, H - K + 1, W - K + 1)
    # Tolerance accounts for the bf16 conv intermediate / bf16 pass-2 output
    # (BN statistics themselves are taken from the f32 accumulator).
    np.testing.assert_allclose(np.asarray(out), np.asarray(ref),
                               rtol=3e-2, atol=3e-2)

    print("KERNEL_OK")
</pallas_src>

<mosaic_0001>
module attributes {stable_mosaic.version = 11 : i64} {
  func.func @conv_stats_kernel(%arg0: i32, %arg1: memref<1x16x16x4xbf16, #tpu.memory_space<vmem>>, %arg2: memref<9x4x128xbf16, #tpu.memory_space<vmem>>, %arg3: memref<1x14x14x128xbf16, #tpu.memory_space<vmem>>, %arg4: memref<1x1x128xf32, #tpu.memory_space<vmem>>, %arg5: memref<1x1x128xf32, #tpu.memory_space<vmem>>) attributes {dimension_semantics = [#tpu.dimension_semantics<parallel>], iteration_bounds = array<i64: 2>, scalar_prefetch = 0 : i64, scratch_operands = 0 : i64, tpu.core_type = #tpu.core_type<tc>, window_params = [{transform_indices = @transform_0, window_bounds = array<i64: 1, 16, 16, 4>}, {pipeline_mode = #tpu.pipeline_mode<synchronous>, transform_indices = @transform_1, window_bounds = array<i64: 9, 4, 128>}, {transform_indices = @transform_2, window_bounds = array<i64: 1, 14, 14, 128>}, {transform_indices = @transform_3, window_bounds = array<i64: 1, 1, 128>}, {transform_indices = @transform_4, window_bounds = array<i64: 1, 1, 128>}]} {
    %cst = arith.constant 0.000000e+00 : f32
    %0 = vector.broadcast %cst : f32 to vector<1x128xf32>
    %c0_i32 = arith.constant 0 : i32
    %c14_i32 = arith.constant 14 : i32
    %1 = arith.addi %c0_i32, %c14_i32 : i32
    %c1_i32 = arith.constant 1 : i32
    %2:2 = scf.for %arg6 = %c0_i32 to %1 step %c1_i32 iter_args(%arg7 = %0, %arg8 = %0) -> (vector<1x128xf32>, vector<1x128xf32>)  : i32 {
      %cst_6 = arith.constant 0.000000e+00 : f32
      %9 = vector.broadcast %cst_6 : f32 to vector<14x128xf32>
      %c0_i32_7 = arith.constant 0 : i32
      %10 = arith.addi %arg6, %c0_i32_7 : i32
      %c0_8 = arith.constant 0 : index
      %11 = arith.index_cast %10 : i32 to index
      %c0_9 = arith.constant 0 : index
      %c0_10 = arith.constant 0 : index
      %12 = vector.load %arg1[%c0_8, %11, %c0_9, %c0_10] : memref<1x16x16x4xbf16, #tpu.memory_space<vmem>>, vector<1x1x16x4xbf16>
      %13 = vector.shape_cast %12 : vector<1x1x16x4xbf16> to vector<16x4xbf16>
      %14 = vector.extract_strided_slice %13 {offsets = [0, 0], sizes = [14, 4], strides = [1, 1]} : vector<16x4xbf16> to vector<14x4xbf16>
      %c0_11 = arith.constant 0 : index
      %c0_12 = arith.constant 0 : index
      %c0_13 = arith.constant 0 : index
      %15 = vector.load %arg2[%c0_11, %c0_12, %c0_13] : memref<9x4x128xbf16, #tpu.memory_space<vmem>>, vector<1x4x128xbf16>
      %16 = vector.shape_cast %15 : vector<1x4x128xbf16> to vector<4x128xbf16>
      %cst_14 = arith.constant dense<0.000000e+00> : vector<14x128xf32>
      %17 = tpu.matmul %14, %16, %cst_14 {dimension_numbers = #tpu.dot_dimension_numbers<[1], [0], [0], [1], [0, 0, 1, 1], [], []>} : vector<14x4xbf16>, vector<4x128xbf16>, vector<14x128xf32> -> vector<14x128xf32>
      %18 = arith.addf %9, %17 : vector<14x128xf32>
      %19 = vector.extract_strided_slice %13 {offsets = [1, 0], sizes = [14, 4], strides = [1, 1]} : vector<16x4xbf16> to vector<14x4xbf16>
      %c1 = arith.constant 1 : index
      %c0_15 = arith.constant 0 : index
      %c0_16 = arith.constant 0 : index
      %20 = vector.load %arg2[%c1, %c0_15, %c0_16] : memref<9x4x128xbf16, #tpu.memory_space<vmem>>, vector<1x4x128xbf16>
      %21 = vector.shape_cast %20 : vector<1x4x128xbf16> to vector<4x128xbf16>
      %cst_17 = arith.constant dense<0.000000e+00> : vector<14x128xf32>
      %22 = tpu.matmul %19, %21, %cst_17 {dimension_numbers = #tpu.dot_dimension_numbers<[1], [0], [0], [1], [0, 0, 1, 1], [], []>} : vector<14x4xbf16>, vector<4x128xbf16>, vector<14x128xf32> -> vector<14x128xf32>
      %23 = arith.addf %18, %22 : vector<14x128xf32>
      %24 = vector.extract_strided_slice %13 {offsets = [2, 0], sizes = [14, 4], strides = [1, 1]} : vector<16x4xbf16> to vector<14x4xbf16>
      %c2 = arith.constant 2 : index
      %c0_18 = arith.constant 0 : index
      %c0_19 = arith.constant 0 : index
      %25 = vector.load %arg2[%c2, %c0_18, %c0_19] : memref<9x4x128xbf16, #tpu.memory_space<vmem>>, vector<1x4x128xbf16>
      %26 = vector.shape_cast %25 : vector<1x4x128xbf16> to vector<4x128xbf16>
      %cst_20 = arith.constant dense<0.000000e+00> : vector<14x128xf32>
      %27 = tpu.matmul %24, %26, %cst_20 {dimension_numbers = #tpu.dot_dimension_numbers<[1], [0], [0], [1], [0, 0, 1, 1], [], []>} : vector<14x4xbf16>, vector<4x128xbf16>, vector<14x128xf32> -> vector<14x128xf32>
      %28 = arith.addf %23, %27 : vector<14x128xf32>
      %c1_i32_21 = arith.constant 1 : i32
      %29 = arith.addi %arg6, %c1_i32_21 : i32
      %c0_22 = arith.constant 0 : index
      %30 = arith.index_cast %29 : i32 to index
      %c0_23 = arith.constant 0 : index
      %c0_24 = arith.constant 0 : index
      %31 = vector.load %arg1[%c0_22, %30, %c0_23, %c0_24] : memref<1x16x16x4xbf16, #tpu.memory_space<vmem>>, vector<1x1x16x4xbf16>
      %32 = vector.shape_cast %31 : vector<1x1x16x4xbf16> to vector<16x4xbf16>
      %33 = vector.extract_strided_slice %32 {offsets = [0, 0], sizes = [14, 4], strides = [1, 1]} : vector<16x4xbf16> to vector<14x4xbf16>
      %c3 = arith.constant 3 : index
      %c0_25 = arith.constant 0 : index
      %c0_26 = arith.constant 0 : index
      %34 = vector.load %arg2[%c3, %c0_25, %c0_26] : memref<9x4x128xbf16, #tpu.memory_space<vmem>>, vector<1x4x128xbf16>
      %35 = vector.shape_cast %34 : vector<1x4x128xbf16> to vector<4x128xbf16>
      %cst_27 = arith.constant dense<0.000000e+00> : vector<14x128xf32>
      %36 = tpu.matmul %33, %35, %cst_27 {dimension_numbers = #tpu.dot_dimension_numbers<[1], [0], [0], [1], [0, 0, 1, 1], [], []>} : vector<14x4xbf16>, vector<4x128xbf16>, vector<14x128xf32> -> vector<14x128xf32>
      %37 = arith.addf %28, %36 : vector<14x128xf32>
      %38 = vector.extract_strided_slice %32 {offsets = [1, 0], sizes = [14, 4], strides = [1, 1]} : vector<16x4xbf16> to vector<14x4xbf16>
      %c4 = arith.constant 4 : index
      %c0_28 = arith.constant 0 : index
      %c0_29 = arith.constant 0 : index
      %39 = vector.load %arg2[%c4, %c0_28, %c0_29] : memref<9x4x128xbf16, #tpu.memory_space<vmem>>, vector<1x4x128xbf16>
      %40 = vector.shape_cast %39 : vector<1x4x128xbf16> to vector<4x128xbf16>
      %cst_30 = arith.constant dense<0.000000e+00> : vector<14x128xf32>
      %41 = tpu.matmul %38, %40, %cst_30 {dimension_numbers = #tpu.dot_dimension_numbers<[1], [0], [0], [1], [0, 0, 1, 1], [], []>} : vector<14x4xbf16>, vector<4x128xbf16>, vector<14x128xf32> -> vector<14x128xf32>
      %42 = arith.addf %37, %41 : vector<14x128xf32>
      %43 = vector.extract_strided_slice %32 {offsets = [2, 0], sizes = [14, 4], strides = [1, 1]} : vector<16x4xbf16> to vector<14x4xbf16>
      %c5 = arith.constant 5 : index
      %c0_31 = arith.constant 0 : index
      %c0_32 = arith.constant 0 : index
      %44 = vector.load %arg2[%c5, %c0_31, %c0_32] : memref<9x4x128xbf16, #tpu.memory_space<vmem>>, vector<1x4x128xbf16>
      %45 = vector.shape_cast %44 : vector<1x4x128xbf16> to vector<4x128xbf16>
      %cst_33 = arith.constant dense<0.000000e+00> : vector<14x128xf32>
      %46 = tpu.matmul %43, %45, %cst_33 {dimension_numbers = #tpu.dot_dimension_numbers<[1], [0], [0], [1], [0, 0, 1, 1], [], []>} : vector<14x4xbf16>, vector<4x128xbf16>, vector<14x128xf32> -> vector<14x128xf32>
      %47 = arith.addf %42, %46 : vector<14x128xf32>
      %c2_i32 = arith.constant 2 : i32
      %48 = arith.addi %arg6, %c2_i32 : i32
      %c0_34 = arith.constant 0 : index
      %49 = arith.index_cast %48 : i32 to index
      %c0_35 = arith.constant 0 : index
      %c0_36 = arith.constant 0 : index
      %50 = vector.load %arg1[%c0_34, %49, %c0_35, %c0_36] : memref<1x16x16x4xbf16, #tpu.memory_space<vmem>>, vector<1x1x16x4xbf16>
      %51 = vector.shape_cast %50 : vector<1x1x16x4xbf16> to vector<16x4xbf16>
      %52 = vector.extract_strided_slice %51 {offsets = [0, 0], sizes = [14, 4], strides = [1, 1]} : vector<16x4xbf16> to vector<14x4xbf16>
      %c6 = arith.constant 6 : index
      %c0_37 = arith.constant 0 : index
      %c0_38 = arith.constant 0 : index
      %53 = vector.load %arg2[%c6, %c0_37, %c0_38] : memref<9x4x128xbf16, #tpu.memory_space<vmem>>, vector<1x4x128xbf16>
      %54 = vector.shape_cast %53 : vector<1x4x128xbf16> to vector<4x128xbf16>
      %cst_39 = arith.constant dense<0.000000e+00> : vector<14x128xf32>
      %55 = tpu.matmul %52, %54, %cst_39 {dimension_numbers = #tpu.dot_dimension_numbers<[1], [0], [0], [1], [0, 0, 1, 1], [], []>} : vector<14x4xbf16>, vector<4x128xbf16>, vector<14x128xf32> -> vector<14x128xf32>
      %56 = arith.addf %47, %55 : vector<14x128xf32>
      %57 = vector.extract_strided_slice %51 {offsets = [1, 0], sizes = [14, 4], strides = [1, 1]} : vector<16x4xbf16> to vector<14x4xbf16>
      %c7 = arith.constant 7 : index
      %c0_40 = arith.constant 0 : index
      %c0_41 = arith.constant 0 : index
      %58 = vector.load %arg2[%c7, %c0_40, %c0_41] : memref<9x4x128xbf16, #tpu.memory_space<vmem>>, vector<1x4x128xbf16>
      %59 = vector.shape_cast %58 : vector<1x4x128xbf16> to vector<4x128xbf16>
      %cst_42 = arith.constant dense<0.000000e+00> : vector<14x128xf32>
      %60 = tpu.matmul %57, %59, %cst_42 {dimension_numbers = #tpu.dot_dimension_numbers<[1], [0], [0], [1], [0, 0, 1, 1], [], []>} : vector<14x4xbf16>, vector<4x128xbf16>, vector<14x128xf32> -> vector<14x128xf32>
      %61 = arith.addf %56, %60 : vector<14x128xf32>
      %62 = vector.extract_strided_slice %51 {offsets = [2, 0], sizes = [14, 4], strides = [1, 1]} : vector<16x4xbf16> to vector<14x4xbf16>
      %c8 = arith.constant 8 : index
      %c0_43 = arith.constant 0 : index
      %c0_44 = arith.constant 0 : index
      %63 = vector.load %arg2[%c8, %c0_43, %c0_44] : memref<9x4x128xbf16, #tpu.memory_space<vmem>>, vector<1x4x128xbf16>
      %64 = vector.shape_cast %63 : vector<1x4x128xbf16> to vector<4x128xbf16>
      %cst_45 = arith.constant dense<0.000000e+00> : vector<14x128xf32>
      %65 = tpu.matmul %62, %64, %cst_45 {dimension_numbers = #tpu.dot_dimension_numbers<[1], [0], [0], [1], [0, 0, 1, 1], [], []>} : vector<14x4xbf16>, vector<4x128xbf16>, vector<14x128xf32> -> vector<14x128xf32>
      %66 = arith.addf %61, %65 : vector<14x128xf32>
      %cst_46 = arith.constant dense<0.000000e+00> : vector<128xf32>
      %67 = vector.multi_reduction <add>, %66, %cst_46 [0] : vector<14x128xf32> to vector<128xf32>
      %68 = vector.shape_cast %67 : vector<128xf32> to vector<1x128xf32>
      %69 = arith.addf %arg7, %68 : vector<1x128xf32>
      %70 = arith.mulf %66, %66 : vector<14x128xf32>
      %cst_47 = arith.constant dense<0.000000e+00> : vector<128xf32>
      %71 = vector.multi_reduction <add>, %70, %cst_47 [0] : vector<14x128xf32> to vector<128xf32>
      %72 = vector.shape_cast %71 : vector<128xf32> to vector<1x128xf32>
      %73 = arith.addf %arg8, %72 : vector<1x128xf32>
      %74 = arith.truncf %66 : vector<14x128xf32> to vector<14x128xbf16>
      %c0_48 = arith.constant 0 : index
      %75 = arith.index_cast %arg6 : i32 to index
      %c0_49 = arith.constant 0 : index
      %c0_50 = arith.constant 0 : index
      %76 = vector.load %arg3[%c0_48, %75, %c0_49, %c0_50] : memref<1x14x14x128xbf16, #tpu.memory_space<vmem>>, vector<1x1x14x128xbf16>
      %77 = vector.shape_cast %76 : vector<1x1x14x128xbf16> to vector<14x128xbf16>
      %78 = vector.shape_cast %74 : vector<14x128xbf16> to vector<1x1x14x128xbf16>
      tpu.vector_store %arg3[%c0_48, %75, %c0_49, %c0_50], %78 {strides = array<i32>} : memref<1x14x14x128xbf16, #tpu.memory_space<vmem>>, vector<1x1x14x128xbf16>,
      scf.yield %69, %73 : vector<1x128xf32>, vector<1x128xf32>
    }
    %c14_i32_0 = arith.constant 14 : i32
    %c0 = arith.constant 0 : index
    %c0_1 = arith.constant 0 : index
    %c0_2 = arith.constant 0 : index
    %3 = vector.load %arg4[%c0, %c0_1, %c0_2] : memref<1x1x128xf32, #tpu.memory_space<vmem>>, vector<1x1x128xf32>
    %4 = vector.shape_cast %3 : vector<1x1x128xf32> to vector<1x128xf32>
    %5 = vector.shape_cast %2#0 : vector<1x128xf32> to vector<1x1x128xf32>
    tpu.vector_store %arg4[%c0, %c0_1, %c0_2], %5 {strides = array<i32>} : memref<1x1x128xf32, #tpu.memory_space<vmem>>, vector<1x1x128xf32>,
    %c0_3 = arith.constant 0 : index
    %c0_4 = arith.constant 0 : index
    %c0_5 = arith.constant 0 : index
    %6 = vector.load %arg5[%c0_3, %c0_4, %c0_5] : memref<1x1x128xf32, #tpu.memory_space<vmem>>, vector<1x1x128xf32>
    %7 = vector.shape_cast %6 : vector<1x1x128xf32> to vector<1x128xf32>
    %8 = vector.shape_cast %2#1 : vector<1x128xf32> to vector<1x1x128xf32>
    tpu.vector_store %arg5[%c0_3, %c0_4, %c0_5], %8 {strides = array<i32>} : memref<1x1x128xf32, #tpu.memory_space<vmem>>, vector<1x1x128xf32>,
    return
  }
  func.func @transform_0(%arg0: i32) -> (i32, i32, i32, i32) {
    %c0_i32 = arith.constant 0 : i32
    %c0_i32_0 = arith.constant 0 : i32
    %c0_i32_1 = arith.constant 0 : i32
    %c0_i32_2 = arith.constant 0 : i32
    return %arg0, %c0_i32, %c0_i32_0, %c0_i32_1 : i32, i32, i32, i32
  }
  func.func @transform_1(%arg0: i32) -> (i32, i32, i32) {
    %c0_i32 = arith.constant 0 : i32
    %c0_i32_0 = arith.constant 0 : i32
    %c0_i32_1 = arith.constant 0 : i32
    %c0_i32_2 = arith.constant 0 : i32
    return %c0_i32, %c0_i32_0, %c0_i32_1 : i32, i32, i32
  }
  func.func @transform_2(%arg0: i32) -> (i32, i32, i32, i32) {
    %c0_i32 = arith.constant 0 : i32
    %c0_i32_0 = arith.constant 0 : i32
    %c0_i32_1 = arith.constant 0 : i32
    %c0_i32_2 = arith.constant 0 : i32
    return %arg0, %c0_i32, %c0_i32_0, %c0_i32_1 : i32, i32, i32, i32
  }
  func.func @transform_3(%arg0: i32) -> (i32, i32, i32) {
    %c0_i32 = arith.constant 0 : i32
    %c0_i32_0 = arith.constant 0 : i32
    %c0_i32_1 = arith.constant 0 : i32
    return %arg0, %c0_i32, %c0_i32_0 : i32, i32, i32
  }
  func.func @transform_4(%arg0: i32) -> (i32, i32, i32) {
    %c0_i32 = arith.constant 0 : i32
    %c0_i32_0 = arith.constant 0 : i32
    %c0_i32_1 = arith.constant 0 : i32
    return %arg0, %c0_i32, %c0_i32_0 : i32, i32, i32
  }
}

module attributes {stable_mosaic.version = 11 : i64} {
  func.func @bn_relu_kernel(%arg0: i32, %arg1: i32, %arg2: memref<1x14x14x128xbf16, #tpu.memory_space<vmem>>, %arg3: memref<1x1x128xf32, #tpu.memory_space<vmem>>, %arg4: memref<1x1x128xf32, #tpu.memory_space<vmem>>, %arg5: memref<1x14x14x128xbf16, #tpu.memory_space<vmem>>) attributes {dimension_semantics = [#tpu.dimension_semantics<parallel>, #tpu.dimension_semantics<parallel>], iteration_bounds = array<i64: 2, 1>, scalar_prefetch = 0 : i64, scratch_operands = 0 : i64, tpu.core_type = #tpu.core_type<tc>, window_params = [{transform_indices = @transform_0, window_bounds = array<i64: 1, 14, 14, 128>}, {pipeline_mode = #tpu.pipeline_mode<synchronous>, transform_indices = @transform_1, window_bounds = array<i64: 1, 1, 128>}, {pipeline_mode = #tpu.pipeline_mode<synchronous>, transform_indices = @transform_2, window_bounds = array<i64: 1, 1, 128>}, {transform_indices = @transform_3, window_bounds = array<i64: 1, 14, 14, 128>}]} {
    %c0 = arith.constant 0 : index
    %c0_0 = arith.constant 0 : index
    %c0_1 = arith.constant 0 : index
    %c0_2 = arith.constant 0 : index
    %0 = vector.load %arg2[%c0, %c0_0, %c0_1, %c0_2] : memref<1x14x14x128xbf16, #tpu.memory_space<vmem>>, vector<1x14x14x128xbf16>
    %1 = vector.shape_cast %0 : vector<1x14x14x128xbf16> to vector<14x14x128xbf16>
    %2 = arith.extf %1 : vector<14x14x128xbf16> to vector<14x14x128xf32>
    %c0_3 = arith.constant 0 : index
    %c0_4 = arith.constant 0 : index
    %c0_5 = arith.constant 0 : index
    %3 = vector.load %arg3[%c0_3, %c0_4, %c0_5] : memref<1x1x128xf32, #tpu.memory_space<vmem>>, vector<1x1x128xf32>
    %4 = vector.broadcast %3 : vector<1x1x128xf32> to vector<14x14x128xf32>
    %5 = arith.mulf %2, %4 : vector<14x14x128xf32>
    %c0_6 = arith.constant 0 : index
    %c0_7 = arith.constant 0 : index
    %c0_8 = arith.constant 0 : index
    %6 = vector.load %arg4[%c0_6, %c0_7, %c0_8] : memref<1x1x128xf32, #tpu.memory_space<vmem>>, vector<1x1x128xf32>
    %7 = vector.broadcast %6 : vector<1x1x128xf32> to vector<14x14x128xf32>
    %8 = arith.addf %5, %7 : vector<14x14x128xf32>
    %cst = arith.constant 0.000000e+00 : f32
    %9 = vector.broadcast %cst : f32 to vector<14x14x128xf32>
    %10 = arith.maximumf %8, %9 : vector<14x14x128xf32>
    %11 = arith.truncf %10 : vector<14x14x128xf32> to vector<14x14x128xbf16>
    %c0_9 = arith.constant 0 : index
    %c0_10 = arith.constant 0 : index
    %c0_11 = arith.constant 0 : index
    %c0_12 = arith.constant 0 : index
    %12 = vector.load %arg5[%c0_9, %c0_10, %c0_11, %c0_12] : memref<1x14x14x128xbf16, #tpu.memory_space<vmem>>, vector<1x14x14x128xbf16>
    %13 = vector.shape_cast %12 : vector<1x14x14x128xbf16> to vector<14x14x128xbf16>
    %14 = vector.shape_cast %11 : vector<14x14x128xbf16> to vector<1x14x14x128xbf16>
    tpu.vector_store %arg5[%c0_9, %c0_10, %c0_11, %c0_12], %14 {strides = array<i32>} : memref<1x14x14x128xbf16, #tpu.memory_space<vmem>>, vector<1x14x14x128xbf16>,
    return
  }
  func.func @transform_0(%arg0: i32, %arg1: i32) -> (i32, i32, i32, i32) {
    %c0_i32 = arith.constant 0 : i32
    %c0_i32_0 = arith.constant 0 : i32
    %c0_i32_1 = arith.constant 0 : i32
    return %arg0, %arg1, %c0_i32, %c0_i32_0 : i32, i32, i32, i32
  }
  func.func @transform_1(%arg0: i32, %arg1: i32) -> (i32, i32, i32) {
    %c0_i32 = arith.constant 0 : i32
    %c0_i32_0 = arith.constant 0 : i32
    %c0_i32_1 = arith.constant 0 : i32
    %c0_i32_2 = arith.constant 0 : i32
    return %c0_i32, %c0_i32_0, %c0_i32_1 : i32, i32, i32
  }
  func.func @transform_2(%arg0: i32, %arg1: i32) -> (i32, i32, i32) {
    %c0_i32 = arith.constant 0 : i32
    %c0_i32_0 = arith.constant 0 : i32
    %c0_i32_1 = arith.constant 0 : i32
    %c0_i32_2 = arith.constant 0 : i32
    return %c0_i32, %c0_i32_0, %c0_i32_1 : i32, i32, i32
  }
  func.func @transform_3(%arg0: i32, %arg1: i32) -> (i32, i32, i32, i32) {
    %c0_i32 = arith.constant 0 : i32
    %c0_i32_0 = arith.constant 0 : i32
    %c0_i32_1 = arith.constant 0 : i32
    return %arg0, %arg1, %c0_i32, %c0_i32_0 : i32, i32, i32, i32
  }
}

</mosaic_0001>

<bundles_post_ra>
// kernel: conv_block_forward.3
= control target key start
LH: loop header
LB: loop body
LE: loop exit
PB: predicated region body
PF: predicated region fallthrough
CT: control target
= control target key end

     0   :  { %s741_s12 = smov 0   ;;  %s743_s13 = smov 0   ;;  %s876_s0 = inlined_call_operand.vmem [shape: bf16[2,14,14,128], index: 0, kind: input, shape index: {}, may-alias: {0,3}]   ;;  %s877_s1 = inlined_call_operand.vmem [shape: f32[1,1,128], index: 1, kind: input, shape index: {}]   ;;  %s878_s2 = inlined_call_operand.vmem [shape: f32[1,1,128], index: 2, kind: input, shape index: {}]   ;;  %s879_s3 = inlined_call_operand.vmem [shape: bf16[2,14,14,128], index: 3, kind: output, shape index: {}, may-alias: {0,3}]  }
   0x1   :  { %s745_s14 = smov 0  }
   0x2 LB: > { %s25_s15 = sadd.s32 1, %s715_s13  ;;  %p609_p0 = scmp.ge.s32.totalorder %s719_s14, 1  ;;  %s719_s14 = sphi %s745_s14, %s13_s14   ;;  %s715_s13 = sphi %s743_s13, %s881_s13   ;;  %s711_s12 = sphi %s741_s12, %s880_s12  }
   0x3   : > { %p27_p1 = scmp.ge.s32.totalorder %s25_s15, 2  ;;  %p159_p2 = scmp.lt.s32.totalorder %s719_s14, 3 }
   0x5   : > { %s883_s15 = smov (%p27_p1, %s25_s15), 0  ;;  %p160_p3 = pnand %p609_p0, %p159_p2 }
   0x6   : > { %p194_p4 = scmp.lt.s32.totalorder (!%p160_p3), %s711_s12, 1 }
   0x7   : > { %163 = sbr.rel (%p160_p3) target bundleno = 62 (0x3e), region = 32 }
   0xc   : > { %s885_s12 = smov (!%p194_p4, %s711_s12), 1  ;;  %v612_v24 = vld [vmem:[%s877_s1] ss:$0 sm:$0xff] }
   0xd   : > { %s672_s16 = smul.u32 112, %s885_s12 }
   0xf   : > { %s767_s19 = scalar_lea.vmem %s876_s0, %s672_s16  ;;  %s833_s26 = scalar_lea.vmem %s879_s3, %s672_s16 }
  0x10   : > { %v215_v0 = vld [vmem:[%s767_s19] ss:$8 sps:$4 sm:$0xff]   ;;  %v216_v1 = vld [vmem:[%s767_s19 + $0x4] sm:$0x7]  ;;  %v218_v2 = vld [vmem:[%s767_s19 + $0xc] sm:$0x7] }
  0x11   : > { %v219_v3 = vld [vmem:[%s767_s19 + $0x10] ss:$8 sps:$4 sm:$0xff]   ;;  %v220_v4 = vld [vmem:[%s767_s19 + $0x14] sm:$0x7]  ;;  %v222_v5 = vld [vmem:[%s767_s19 + $0x1c] sm:$0x7]  ;;  %v243_v6 = vunpack.c.l.bf16 %v215_v0  ;;  %v244_v7 = vunpack.c.l.bf16 %v216_v1  ;;  %v245_v8 = vunpack.c.h.bf16 %v215_v0  ;;  %v246_v9 = vunpack.c.l.bf16 %v218_v2 }
  0x12   : > { %v223_v10 = vld [vmem:[%s767_s19 + $0x20] ss:$8 sps:$4 sm:$0xff]   ;;  %v224_v11 = vld [vmem:[%s767_s19 + $0x24] sm:$0x7]  ;;  %v226_v12 = vld [vmem:[%s767_s19 + $0x2c] sm:$0x7]  ;;  %v247_v13 = vunpack.c.l.bf16 %v219_v3  ;;  %v248_v14 = vunpack.c.l.bf16 %v220_v4  ;;  %v249_v15 = vunpack.c.h.bf16 %v219_v3  ;;  %v250_v16 = vunpack.c.l.bf16 %v222_v5 }
  0x13   : > { %v227_v17 = vld [vmem:[%s767_s19 + $0x30] ss:$8 sps:$4 sm:$0xff]   ;;  %v228_v18 = vld [vmem:[%s767_s19 + $0x34] sm:$0x7]  ;;  %v230_v19 = vld [vmem:[%s767_s19 + $0x3c] sm:$0x7]  ;;  %v251_v20 = vunpack.c.l.bf16 %v223_v10  ;;  %v252_v21 = vunpack.c.l.bf16 %v224_v11  ;;  %v253_v22 = vunpack.c.h.bf16 %v223_v10  ;;  %v254_v23 = vunpack.c.l.bf16 %v226_v12 }
  0x14   : > { %v231_v25 = vld [vmem:[%s767_s19 + $0x40] ss:$8 sps:$4 sm:$0xff]   ;;  %v232_v26 = vld [vmem:[%s767_s19 + $0x44] sm:$0x7]  ;;  %v234_v27 = vld [vmem:[%s767_s19 + $0x4c] sm:$0x7]  ;;  %v255_v28 = vunpack.c.l.bf16 %v227_v17  ;;  %v256_v29 = vunpack.c.l.bf16 %v228_v18  ;;  %v257_v30 = vunpack.c.h.bf16 %v227_v17  ;;  %v258_v31 = vunpack.c.l.bf16 %v230_v19 }
  0x15   : > { %v235_v32 = vld [vmem:[%s767_s19 + $0x50] ss:$8 sps:$4 sm:$0xff]   ;;  %v236_v33 = vld [vmem:[%s767_s19 + $0x54] sm:$0x7]  ;;  %v238_v34 = vld [vmem:[%s767_s19 + $0x5c] sm:$0x7]  ;;  %v259_v35 = vunpack.c.l.bf16 %v231_v25  ;;  %v260_v36 = vunpack.c.l.bf16 %v232_v26  ;;  %v261_v37 = vunpack.c.h.bf16 %v231_v25  ;;  %v262_v38 = vunpack.c.l.bf16 %v234_v27 }
  0x16   : > { %v239_v39 = vld [vmem:[%s767_s19 + $0x60] ss:$8 sps:$4 sm:$0xff]   ;;  %v240_v40 = vld [vmem:[%s767_s19 + $0x64] sm:$0x7]  ;;  %v242_v41 = vld [vmem:[%s767_s19 + $0x6c] sm:$0x7]  ;;  %v263_v42 = vunpack.c.l.bf16 %v235_v32  ;;  %v264_v43 = vunpack.c.l.bf16 %v236_v33  ;;  %v265_v44 = vunpack.c.h.bf16 %v235_v32  ;;  %v266_v45 = vunpack.c.l.bf16 %v238_v34 }
  0x17   : > { %v267_v46 = vunpack.c.l.bf16 %v239_v39  ;;  %v268_v47 = vunpack.c.l.bf16 %v240_v40  ;;  %v269_v48 = vunpack.c.h.bf16 %v239_v39  ;;  %v270_v49 = vunpack.c.l.bf16 %v242_v41 }
  0x18   : > { %v278_v50 = vmul.f32 %v612_v24, %v243_v6  ;;  %v279_v51 = vmul.f32 %v612_v24, %v244_v7  ;;  %v280_v52 = vmul.f32 %v612_v24, %v245_v8  ;;  %v281_v53 = vmul.f32 %v612_v24, %v246_v9  ;;  %v613_v6 = vld [vmem:[%s878_s2] ss:$0 sm:$0xff] }
  0x19   : > { %v282_v54 = vmul.f32 %v612_v24, %v247_v13  ;;  %v283_v55 = vmul.f32 %v612_v24, %v248_v14  ;;  %v284_v56 = vmul.f32 %v612_v24, %v249_v15  ;;  %v285_v57 = vmul.f32 %v612_v24, %v250_v16 }
  0x1a   : > { %v286_v58 = vmul.f32 %v612_v24, %v251_v20  ;;  %v287_v59 = vmul.f32 %v612_v24, %v252_v21  ;;  %v288_v60 = vmul.f32 %v612_v24, %v253_v22  ;;  %v289_v61 = vmul.f32 %v612_v24, %v254_v23 }
  0x1b   : > { %v290_v62 = vmul.f32 %v612_v24, %v255_v28  ;;  %v291_v63 = vmul.f32 %v612_v24, %v256_v29  ;;  %v292_v0 = vmul.f32 %v612_v24, %v257_v30  ;;  %v293_v1 = vmul.f32 %v612_v24, %v258_v31 }
  0x1c   : > { %v294_v2 = vmul.f32 %v612_v24, %v259_v35  ;;  %v295_v3 = vmul.f32 %v612_v24, %v260_v36  ;;  %v296_v4 = vmul.f32 %v612_v24, %v261_v37  ;;  %v297_v5 = vmul.f32 %v612_v24, %v262_v38 }
  0x1d   : > { %v298_v7 = vmul.f32 %v612_v24, %v263_v42  ;;  %v299_v8 = vmul.f32 %v612_v24, %v264_v43  ;;  %v300_v9 = vmul.f32 %v612_v24, %v265_v44  ;;  %v301_v10 = vmul.f32 %v612_v24, %v266_v45 }
  0x1e   : > { %v302_v11 = vmul.f32 %v612_v24, %v267_v46  ;;  %v303_v12 = vmul.f32 %v612_v24, %v268_v47  ;;  %v304_v13 = vmul.f32 %v612_v24, %v269_v48  ;;  %v305_v14 = vmul.f32 %v612_v24, %v270_v49 }
  0x1f   : > { %v313_v15 = vadd.f32 %v613_v6, %v278_v50  ;;  %v314_v16 = vadd.f32 %v613_v6, %v279_v51  ;;  %v315_v17 = vadd.f32 %v613_v6, %v280_v52  ;;  %v316_v18 = vadd.f32 %v613_v6, %v281_v53 }
  0x20   : > { %v317_v19 = vadd.f32 %v613_v6, %v282_v54  ;;  %v318_v20 = vadd.f32 %v613_v6, %v283_v55  ;;  %v319_v21 = vadd.f32 %v613_v6, %v284_v56  ;;  %v320_v22 = vadd.f32 %v613_v6, %v285_v57 }
  0x21   : > { %v321_v23 = vadd.f32 %v613_v6, %v286_v58  ;;  %v322_v25 = vadd.f32 %v613_v6, %v287_v59  ;;  %v323_v26 = vadd.f32 %v613_v6, %v288_v60  ;;  %v324_v27 = vadd.f32 %v613_v6, %v289_v61 }
  0x22   : > { %v325_v28 = vadd.f32 %v613_v6, %v290_v62  ;;  %v326_v29 = vadd.f32 %v613_v6, %v291_v63  ;;  %v327_v30 = vadd.f32 %v613_v6, %v292_v0  ;;  %v328_v31 = vadd.f32 %v613_v6, %v293_v1 }
  0x23   : > { %v796_v32 = vadd.f32 %v613_v6, %v294_v2  ;;  %v798_v33 = vadd.f32 %v613_v6, %v295_v3  ;;  %v800_v24 = vadd.f32 %v613_v6, %v296_v4  ;;  %v802_v34 = vadd.f32 %v613_v6, %v297_v5 }
  0x24   : > { %v804_v35 = vadd.f32 %v613_v6, %v298_v7  ;;  %v806_v36 = vadd.f32 %v613_v6, %v299_v8  ;;  %v808_v37 = vadd.f32 %v613_v6, %v300_v9  ;;  %v810_v38 = vadd.f32 %v613_v6, %v301_v10 }
  0x25   : > { %v812_v39 = vadd.f32 %v613_v6, %v302_v11  ;;  %v814_v40 = vadd.f32 %v613_v6, %v303_v12  ;;  %v816_v41 = vadd.f32 %v613_v6, %v304_v13  ;;  %v818_v42 = vadd.f32 %v613_v6, %v305_v14 }
  0x26   : > { %v341_v43 = vmax.f32 %v313_v15, 0.0  ;;  %v342_v44 = vmax.f32 %v314_v16, 0.0  ;;  %v343_v45 = vmax.f32 %v315_v17, 0.0  ;;  %v344_v46 = vmax.f32 %v316_v18, 0.0 }
  0x27   : > { %v345_v47 = vmax.f32 %v317_v19, 0.0  ;;  %v346_v48 = vmax.f32 %v318_v20, 0.0  ;;  %v347_v49 = vmax.f32 %v319_v21, 0.0  ;;  %v348_v50 = vmax.f32 %v320_v22, 0.0 }
  0x28   : > { %v349_v51 = vmax.f32 %v321_v23, 0.0  ;;  %v350_v52 = vmax.f32 %v322_v25, 0.0  ;;  %v351_v53 = vmax.f32 %v323_v26, 0.0  ;;  %v352_v54 = vmax.f32 %v324_v27, 0.0 }
  0x29   : > { %v353_v55 = vmax.f32 %v325_v28, 0.0  ;;  %v354_v56 = vmax.f32 %v326_v29, 0.0  ;;  %v355_v57 = vmax.f32 %v327_v30, 0.0  ;;  %v356_v58 = vmax.f32 %v328_v31, 0.0 }
  0x2a   : > { %v357_v59 = vmax.f32 %v796_v32, 0.0  ;;  %v358_v60 = vmax.f32 %v798_v33, 0.0  ;;  %v359_v61 = vmax.f32 %v800_v24, 0.0  ;;  %v360_v62 = vmax.f32 %v802_v34, 0.0 }
  0x2b   : > { %v361_v63 = vmax.f32 %v804_v35, 0.0  ;;  %v362_v0 = vmax.f32 %v806_v36, 0.0  ;;  %v363_v1 = vmax.f32 %v808_v37, 0.0  ;;  %v364_v2 = vmax.f32 %v810_v38, 0.0 }
  0x2c   : > { %v365_v3 = vmax.f32 %v812_v39, 0.0  ;;  %v366_v4 = vmax.f32 %v814_v40, 0.0  ;;  %v367_v5 = vmax.f32 %v816_v41, 0.0  ;;  %v368_v6 = vmax.f32 %v818_v42, 0.0 }
  0x2d   : > { %v644_v7 = vpack.c.bf16 %v341_v43, %v341_v43  ;;  %v645_v8 = vpack.c.bf16 %v342_v44, %v342_v44  ;;  %v646_v9 = vpack.c.bf16 %v343_v45, %v343_v45  ;;  %v647_v10 = vpack.c.bf16 %v344_v46, %v344_v46 }
  0x2e   : > { %v648_v11 = vpack.c.bf16 %v345_v47, %v345_v47  ;;  %v649_v12 = vpack.c.bf16 %v346_v48, %v346_v48  ;;  %v650_v13 = vpack.c.bf16 %v347_v49, %v347_v49  ;;  %v651_v14 = vpack.c.bf16 %v348_v50, %v348_v50 }
  0x2f   : > { %v652_v15 = vpack.c.bf16 %v349_v51, %v349_v51  ;;  %v653_v16 = vpack.c.bf16 %v350_v52, %v350_v52  ;;  %v654_v17 = vpack.c.bf16 %v351_v53, %v351_v53  ;;  %v655_v18 = vpack.c.bf16 %v352_v54, %v352_v54  ;;  %481 = vst [vmem:[%s833_s26] sm:$0xf] %v644_v7 }
  0x30   : > { %482 = vst [vmem:[%s833_s26 + $0x4] sm:$0x7] %v645_v8  ;;  %483 = vst [vmem:[%s833_s26 + $0x8] sm:$0xf] %v646_v9  ;;  %v656_v19 = vpack.c.bf16 %v353_v55, %v353_v55  ;;  %v657_v20 = vpack.c.bf16 %v354_v56, %v354_v56  ;;  %v658_v21 = vpack.c.bf16 %v355_v57, %v355_v57 }
  0x31   : > { %484 = vst [vmem:[%s833_s26 + $0xc] sm:$0x7] %v647_v10  ;;  %v659_v22 = vpack.c.bf16 %v356_v58, %v356_v58  ;;  %485 = vst [vmem:[%s833_s26 + $0x10] sm:$0xf] %v648_v11  ;;  %v660_v23 = vpack.c.bf16 %v357_v59, %v357_v59  ;;  %v661_v25 = vpack.c.bf16 %v358_v60, %v358_v60 }
  0x32   : > { %486 = vst [vmem:[%s833_s26 + $0x14] sm:$0x7] %v649_v12  ;;  %487 = vst [vmem:[%s833_s26 + $0x18] sm:$0xf] %v650_v13  ;;  %v662_v26 = vpack.c.bf16 %v359_v61, %v359_v61  ;;  %v663_v27 = vpack.c.bf16 %v360_v62, %v360_v62  ;;  %v664_v28 = vpack.c.bf16 %v361_v63, %v361_v63 }
  0x33   : > { %488 = vst [vmem:[%s833_s26 + $0x1c] sm:$0x7] %v651_v14  ;;  %489 = vst [vmem:[%s833_s26 + $0x20] sm:$0xf] %v652_v15  ;;  %v665_v29 = vpack.c.bf16 %v362_v0, %v362_v0  ;;  %v666_v30 = vpack.c.bf16 %v363_v1, %v363_v1  ;;  %v667_v31 = vpack.c.bf16 %v364_v2, %v364_v2 }
  0x34   : > { %490 = vst [vmem:[%s833_s26 + $0x24] sm:$0x7] %v653_v16  ;;  %491 = vst [vmem:[%s833_s26 + $0x28] sm:$0xf] %v654_v17  ;;  %v668_v32 = vpack.c.bf16 %v365_v3, %v365_v3  ;;  %v669_v33 = vpack.c.bf16 %v366_v4, %v366_v4  ;;  %v670_v24 = vpack.c.bf16 %v367_v5, %v367_v5 }
  0x35   : > { %492 = vst [vmem:[%s833_s26 + $0x2c] sm:$0x7] %v655_v18  ;;  %493 = vst [vmem:[%s833_s26 + $0x30] sm:$0xf] %v656_v19  ;;  %v671_v34 = vpack.c.bf16 %v368_v6, %v368_v6 }
  0x36   : > { %494 = vst [vmem:[%s833_s26 + $0x34] sm:$0x7] %v657_v20  ;;  %495 = vst [vmem:[%s833_s26 + $0x38] sm:$0xf] %v658_v21 }
  0x37   : > { %496 = vst [vmem:[%s833_s26 + $0x3c] sm:$0x7] %v659_v22  ;;  %497 = vst [vmem:[%s833_s26 + $0x40] sm:$0xf] %v660_v23 }
  0x38   : > { %498 = vst [vmem:[%s833_s26 + $0x44] sm:$0x7] %v661_v25  ;;  %499 = vst [vmem:[%s833_s26 + $0x48] sm:$0xf] %v662_v26 }
  0x39   : > { %500 = vst [vmem:[%s833_s26 + $0x4c] sm:$0x7] %v663_v27  ;;  %501 = vst [vmem:[%s833_s26 + $0x50] sm:$0xf] %v664_v28 }
  0x3a   : > { %502 = vst [vmem:[%s833_s26 + $0x54] sm:$0x7] %v665_v29  ;;  %503 = vst [vmem:[%s833_s26 + $0x58] sm:$0xf] %v666_v30 }
  0x3b   : > { %504 = vst [vmem:[%s833_s26 + $0x5c] sm:$0x7] %v667_v31  ;;  %505 = vst [vmem:[%s833_s26 + $0x60] sm:$0xf] %v668_v32 }
  0x3c   : > { %506 = vst [vmem:[%s833_s26 + $0x64] sm:$0x7] %v669_v33  ;;  %507 = vst [vmem:[%s833_s26 + $0x68] sm:$0xf] %v670_v24 }
  0x3d   : > { %508 = vst [vmem:[%s833_s26 + $0x6c] sm:$0x7] %v671_v34 }
  0x3e PF: > { %s13_s14 = sadd.s32 1, %s719_s14   ;;  %s880_s12 = smov %s715_s13 }
  0x3f   : > { %p10_p5 = scmp.ge.s32.totalorder %s13_s14, 4   ;;  %s881_s13 = smov %s883_s15 }
  0x41   :  { %12 = sbr.rel (!%p10_p5) target bundleno = 2 (0x2), region = 62 }

// kernel: conv_block_forward.2
= control target key start
LH: loop header
LB: loop body
LE: loop exit
PB: predicated region body
PF: predicated region fallthrough
CT: control target
= control target key end

     0   :  { %s1109_s15 = smov 0   ;;  %s1255_s0 = inlined_call_operand.vmem [shape: bf16[2,16,16,4], index: 0, kind: input, shape index: {}]   ;;  %s1256_s1 = inlined_call_operand.vmem [shape: bf16[9,4,128], index: 1, kind: input, shape index: {}]   ;;  %s1257_s2 = inlined_call_operand.vmem [shape: bf16[2,14,14,128], index: 2, kind: output, shape index: {0}]   ;;  %s1258_s3 = inlined_call_operand.vmem [shape: f32[2,1,128], index: 3, kind: output, shape index: {1}]   ;;  %s1259_s4 = inlined_call_operand.vmem [shape: f32[2,1,128], index: 4, kind: output, shape index: {2}]  }
   0x1 LB: > { %s894_s16 = sadd.s32 4294967295, %s1068_s15   ;;  %p898_p0 = scmp.ge.s32.totalorder %s1068_s15, 1  ;;  %s1068_s15 = sphi %s1109_s15, %s15_s15  }
   0x2   : > { %p167_p1 = scmp.lt.s32.totalorder %s1068_s15, 3 }
   0x4   : > { %p168_p2 = pnand %p898_p0, %p167_p1 }
   0x5   : > { %p199_p3 = scmp.lt.s32.totalorder (!%p168_p2), %s894_s16, 1  ;;  %s1143_s5 = smov (!%p168_p2), 0  }
   0x6   : > { %171 = sbr.rel (%p168_p2) target bundleno = 276 (0x114), region = 28 }
   0xb   : > { %s1263_s16 = smov (!%p199_p3, %s894_s16), 1  ;;  %v1139_v0 = vmov 0.0   ;;  %v1141_v1 = vmov 0.0  }
   0xc   : > { %s935_s17 = sshll.u32 %s1263_s16, 7  ;;  %s1012_s18 = smul.u32 112, %s1263_s16 }
   0xd   : > { %s1124_s21 = scalar_lea.vmem %s1255_s0, %s935_s17  ;;  %s211_s24 = scalar_lea.vmem %s1258_s3, %s1263_s16 }
   0xe   : > { %s1133_s27 = scalar_lea.vmem %s1257_s2, %s1012_s18  ;;  %s214_s30 = scalar_lea.vmem %s1259_s4, %s1263_s16 }
   0xf LB: >> { %v904_v2 = vld [vmem:[%s1256_s1 + $0x2] sm:$0x3]  ;;  %vm248_vm0 = vcmask 1041408   ;;  %v229_v3 = vld [vmem:[%s1256_s1] sm:$0x3]  ;;  %v1082_v4 = vmov 0.0   ;;  %s1080_s5 = sphi %s1143_s5, %s221_s5   ;;  %v1076_v1 = vphi %v1141_v1, %v1261_v1   ;;  %v1072_v0 = vphi %v1139_v0, %v1260_v0  }
  0x10   : >> { %958 = vmatprep.subr.bf16.mxu0 %v1082_v4  ;;  %v250_v5 = vsel %vm248_vm0, %v904_v2, 0  ;;  %964 = vmatprep.subr.bf16.mxu1 %v1082_v4  ;;  %v296_v6 = vsel %vm248_vm0, %v229_v3, 0  ;;  %s936_s10 = sshll.u32 %s1080_s5, 3  ;;  %v913_v7 = vld [vmem:[%s1256_s1 + $0x6] sm:$0x3]  ;;  %vm1083_vm1 = vmmov 0  }
  0x11   : >> { %959 = vmatpush3.bf16.msra.mxu0 %v250_v5  ;;  %965 = vmatpush3.bf16.msra.mxu1 %v296_v6  ;;  %s226_s13 = scalar_lea.vmem %s1124_s21, %s936_s10  ;;  %vm244_vm2 = vcmask 31744   ;;  %v408_v9 = vsel %vm248_vm0, %v913_v7, 0  ;;  %v908_v12 = vld [vmem:[%s1256_s1 + $0x4] sm:$0x3]  ;;  %v918_v14 = vld [vmem:[%s1256_s1 + $0xa] sm:$0x3]  ;;  %s763_s7 = scalar_lea.vmem %s1133_s27, %s936_s10 }
  0x12   : >> { %960 = vmatprep.mubr.msk.bf16.mxu0 %vm1083_vm1, %v1082_v4  ;;  %966 = vmatprep.mubr.msk.bf16.mxu1 %vm1083_vm1, %v1082_v4  ;;  %v1047_v8 = vld [vmem:[%s226_s13] sm:$0xff]   ;;  %v346_v16 = vsel %vm248_vm0, %v908_v12, 0  ;;  %v1048_v17 = vld [vmem:[%s226_s13 + $0x8] sm:$0xff]   ;;  %v517_v18 = vsel %vm248_vm0, %v918_v14, 0  ;;  %v1049_v19 = vld [vmem:[%s226_s13 + $0x10] sm:$0xff]   ;;  %vm733_vm3 = vcmask 1045504  }
  0x13   : >> { %970 = vmatprep.subr.bf16.mxu0 %v1082_v4  ;;  %976 = vmatprep.subr.bf16.mxu1 %v1082_v4  ;;  %v238_v10 = vshrl.u32 %v1047_v8, 16  ;;  %v240_v11 = vshll.u32 %v1047_v8, 16  ;;  %v916_v20 = vld [vmem:[%s1256_s1 + $0x8] sm:$0x3]  ;;  %v341_v21 = vrot.slane %v1047_v8, 1  ;;  %v457_v22 = vshll.u32 %v1048_v17, 16 }
  0x14   : >> { %967 = vmatmul.mubr.msk.bf16.vlgmr.msra.gmra.mxu1 %vm244_vm2, %v1047_v8  ;;  %v926_v23 = vld [vmem:[%s1256_s1 + $0xe] sm:$0x3]  ;;  %v465_v24 = vsel %vm248_vm0, %v916_v20, 0  ;;  %v512_v25 = vrot.slane %v1048_v17, 1  ;;  %v628_v26 = vshll.u32 %v1049_v19, 16  ;;  %v455_v27 = vshrl.u32 %v1048_v17, 16 }
  0x15   : >> { %977 = vmatpush3.bf16.msra.mxu1 %v408_v9  ;;  %978 = vmatprep.mubr.msk.bf16.mxu1 %vm1083_vm1, %v1082_v4  ;;  %v242_v13 = vrot.slane %v240_v11, 1  ;;  %v459_v28 = vrot.slane %v457_v22, 1  ;;  %v636_v29 = vsel %vm248_vm0, %v926_v23, 0  ;;  %v626_v30 = vshrl.u32 %v1049_v19, 16  ;;  %v923_v32 = vld [vmem:[%s1256_s1 + $0xc] sm:$0x3] }
  0x16   : >> { %988 = vmatprep.subr.bf16.mxu1 %v1082_v4  ;;  %v630_v31 = vrot.slane %v628_v26, 1  ;;  %v579_v34 = vsel %vm248_vm0, %v923_v32, 0  ;;  %v928_v36 = vld [vmem:[%s1256_s1 + $0x10] sm:$0x3]  ;;  %v683_v38 = vrot.slane %v1049_v19, 1  ;;  %s221_s5 = sadd.s32 1, %s1080_s5  }
  0x17   : >> { %v243_v15 = vor.u32 %v242_v13, %v238_v10  ;;  %v460_v33 = vor.u32 %v459_v28, %v455_v27  ;;  %v688_v37 = vsel %vm248_vm0, %v928_v36, 0  ;;  %p218_p4 = scmp.ge.s32.totalorder %s221_s5, 14  }
  0x18   : >> { %v631_v35 = vor.u32 %v630_v31, %v626_v30 }
  0x19   : >> { %961 = vmatmul.mubr.msk.bf16.vlgmr.msra.gmra.mxu0 %vm244_vm2, %v243_v15 }
  0x1a   : >> { %971 = vmatpush3.bf16.msra.mxu0 %v346_v16  ;;  %972 = vmatprep.mubr.msk.bf16.mxu0 %vm1083_vm1, %v1082_v4 }
  0x1b   : >> { %982 = vmatprep.subr.bf16.mxu0 %v1082_v4 }
  0x1c   : >> { %979 = vmatmul.mubr.msk.bf16.vlgmr.msra.gmra.mxu1 %vm244_vm2, %v1048_v17 }
  0x1d   : >> { %989 = vmatpush3.bf16.msra.mxu1 %v517_v18  ;;  %990 = vmatprep.mubr.msk.bf16.mxu1 %vm1083_vm1, %v1082_v4 }
  0x1e   : >> { %1000 = vmatprep.subr.bf16.mxu1 %v1082_v4 }
  0x21   : >> { %973 = vmatmul.mubr.msk.bf16.vlgmr.msra.gmra.mxu0 %vm244_vm2, %v341_v21 }
  0x22   : >> { %983 = vmatpush3.bf16.msra.mxu0 %v465_v24  ;;  %984 = vmatprep.mubr.msk.bf16.mxu0 %vm1083_vm1, %v1082_v4 }
  0x23   : >> { %994 = vmatprep.subr.bf16.mxu0 %v1082_v4 }
  0x24   : >> { %991 = vmatmul.mubr.msk.bf16.vlgmr.msra.gmra.mxu1 %vm244_vm2, %v512_v25 }
  0x25   : >> { %1001 = vmatpush3.bf16.msra.mxu1 %v636_v29  ;;  %1002 = vmatprep.mubr.msk.bf16.mxu1 %vm1083_vm1, %v1082_v4 }
  0x29   : >> { %985 = vmatmul.mubr.msk.bf16.vlgmr.msra.gmra.mxu0 %vm244_vm2, %v460_v33 }
  0x2a   : >> { %995 = vmatpush3.bf16.msra.mxu0 %v579_v34  ;;  %996 = vmatprep.mubr.msk.bf16.mxu0 %vm1083_vm1, %v1082_v4 }
  0x2b   : >> { %1006 = vmatprep.subr.bf16.mxu0 %v1082_v4 }
  0x2c   : >> { %1003 = vmatmul.mubr.msk.bf16.vlgmr.msra.gmra.mxu1 %vm244_vm2, %v631_v35 }
  0x31   : >> { %997 = vmatmul.mubr.msk.bf16.vlgmr.msra.gmra.mxu0 %vm244_vm2, %v1049_v19 }
  0x32   : >> { %1007 = vmatpush3.bf16.msra.mxu0 %v688_v37  ;;  %1008 = vmatprep.mubr.msk.bf16.mxu0 %vm1083_vm1, %v1082_v4 }
  0x39   : >> { %1009 = vmatmul.mubr.msk.bf16.vlgmr.msra.gmra.mxu0 %vm244_vm2, %v683_v38 }
  0xd4   : >> { %v332_v39 = vpop.f32.mrf.mxu1 }
  0xd6   : >> { %v968_v40 = vpop.f32.mrf.mxu1 }
  0xd8   : >> { %v335_v41 = vpop.f32.mrf.mxu1 }
  0xd9   : >> { %v286_v42 = vpop.f32.mrf.mxu0 }
  0xda   : >> { %v969_v43 = vpop.f32.mrf.mxu1  ;;  %v333_v56 = vadd.f32 %v332_v39, %v286_v42 }
  0xdb   : >> { %v962_v44 = vpop.f32.mrf.mxu0 }
  0xdc   : >> { %v444_v45 = vpop.f32.mrf.mxu1 }
  0xdd   : >> { %v289_v46 = vpop.f32.mrf.mxu0 }
  0xde   : >> { %v980_v47 = vpop.f32.mrf.mxu1  ;;  %v336_v62 = vadd.f32 %v335_v41, %v289_v46 }
  0xdf   : >> { %v963_v48 = vpop.f32.mrf.mxu0 }
  0xe0   : >> { %v447_v49 = vpop.f32.mrf.mxu1 }
  0xe1   : >> { %v382_v50 = vpop.f32.mrf.mxu0 }
  0xe2   : >> { %v981_v51 = vpop.f32.mrf.mxu1  ;;  %v389_v59 = vadd.f32 %v382_v50, %v333_v56 }
  0xe3   : >> { %v974_v52 = vpop.f32.mrf.mxu0 }
  0xe4   : >> { %v553_v53 = vpop.f32.mrf.mxu1  ;;  %v451_v3 = vadd.f32 %v444_v45, %v389_v59 }
  0xe5   : >> { %v385_v54 = vpop.f32.mrf.mxu0 }
  0xe6   : >> { %v992_v55 = vpop.f32.mrf.mxu1  ;;  %v390_v4 = vadd.f32 %v385_v54, %v336_v62 }
  0xe7   : >> { %v975_v57 = vpop.f32.mrf.mxu0 }
  0xe8   : >> { %v556_v58 = vpop.f32.mrf.mxu1  ;;  %v452_v10 = vadd.f32 %v447_v49, %v390_v4 }
  0xe9   : >> { %v501_v60 = vpop.f32.mrf.mxu0 }
  0xea   : >> { %v993_v61 = vpop.f32.mrf.mxu1  ;;  %v508_v7 = vadd.f32 %v501_v60, %v451_v3 }
  0xeb   : >> { %v986_v63 = vpop.f32.mrf.mxu0 }
  0xec   : >> { %v672_v2 = vpop.f32.mrf.mxu1  ;;  %v560_v13 = vadd.f32 %v553_v53, %v508_v7 }
  0xed   : >> { %v504_v5 = vpop.f32.mrf.mxu0 }
  0xee   : >> { %v1004_v6 = vpop.f32.mrf.mxu1  ;;  %v509_v14 = vadd.f32 %v504_v5, %v452_v10 }
  0xef   : >> { %v987_v8 = vpop.f32.mrf.mxu0 }
  0xf0   : >> { %v675_v9 = vpop.f32.mrf.mxu1  ;;  %v561_v18 = vadd.f32 %v556_v58, %v509_v14 }
  0xf1   : >> { %v615_v11 = vpop.f32.mrf.mxu0 }
  0xf2   : >> { %v1005_v12 = vpop.f32.mrf.mxu1  ;;  %v622_v16 = vadd.f32 %v615_v11, %v560_v13 }
  0xf3   : >> { %v998_v15 = vpop.f32.mrf.mxu0 }
  0xf4   : >> { %v679_v20 = vadd.f32 %v672_v2, %v622_v16 }
  0xf5   : >> { %v618_v17 = vpop.f32.mrf.mxu0 }
  0xf6   : >> { %v623_v21 = vadd.f32 %v618_v17, %v561_v18 }
  0xf7   : >> { %v999_v19 = vpop.f32.mrf.mxu0 }
  0xf8   : >> { %v680_v25 = vadd.f32 %v675_v9, %v623_v21 }
  0xf9   : >> { %v724_v22 = vpop.f32.mrf.mxu0 }
  0xfa   : >> { %v731_v23 = vadd.f32 %v724_v22, %v679_v20 }
  0xfb   : >> { %v1010_v24 = vpop.f32.mrf.mxu0 }
  0xfc   : >> { %v937_v26 = vpack.c.bf16 %v731_v23, %v731_v23  ;;  %v743_v33 = vmul.f32 %v731_v23, %v731_v23 }
  0xfd   : >> { %v727_v27 = vpop.f32.mrf.mxu0 }
  0xfe   : >> { %764 = vst [vmem:[%s763_s7] sm:$0xf] %v937_v26  ;;  %v732_v28 = vadd.f32 %v727_v27, %v680_v25 }
  0xff   : >> { %v1011_v29 = vpop.f32.mrf.mxu0 }
 0x100   : >> { %v734_v30 = vsel %vm733_vm3, %v732_v28, 0.0  ;;  %v744_v31 = vmul.f32 %v732_v28, %v732_v28  ;;  %v938_v32 = vpack.c.bf16 %v732_v28, %v732_v28 }
 0x101   : >> { %v735_v34 = vadd.f32 %v734_v30, %v731_v23 }
 0x102   : >> { %v745_v35 = vsel %vm733_vm3, %v744_v31, 0.0  ;;  %765 = vst [vmem:[%s763_s7 + $0x4] sm:$0x7] %v938_v32 }
 0x103   : >> { %v736_v36 = vrot.slane %v735_v34, 4  ;;  %v746_v37 = vadd.f32 %v745_v35, %v743_v33 }
 0x105   : >> { %v737_v38 = vadd.f32 %v736_v36, %v735_v34  ;;  %v747_v39 = vrot.slane %v746_v37, 4 }
 0x107   : >> { %v738_v40 = vrot.slane %v737_v38, 2  ;;  %v748_v41 = vadd.f32 %v747_v39, %v746_v37 }
 0x109   : >> { %v739_v42 = vadd.f32 %v738_v40, %v737_v38  ;;  %v749_v43 = vrot.slane %v748_v41, 2 }
 0x10b   : >> { %v740_v44 = vrot.slane %v739_v42, 1  ;;  %v750_v45 = vadd.f32 %v749_v43, %v748_v41 }
 0x10d   : >> { %v741_v46 = vadd.f32 %v740_v44, %v739_v42  ;;  %v751_v47 = vrot.slane %v750_v45, 1 }
 0x10f   : >> { %v742_v48 = vadd.f32 %v1076_v1, %v741_v46   ;;  %v752_v49 = vadd.f32 %v751_v47, %v750_v45  ;;  %220 = sbr.rel (!%p218_p4) target bundleno = 15 (0xf), region = 101 }
 0x111   : >> { %v753_v50 = vadd.f32 %v1072_v0, %v752_v49   ;;  %v1261_v1 = vmov %v742_v48  ;;  %766 = vst [vmem:[%s211_s24] sm:$0x1] (%p218_p4), %v742_v48 }
 0x113   : >> { %v1260_v0 = vmov %v753_v50  ;;  %767 = vst [vmem:[%s214_s30] sm:$0x1] (%p218_p4), %v753_v50 }
 0x114 PF: > { %s15_s15 = sadd.s32 1, %s1068_s15  }
 0x115   : > { %p12_p5 = scmp.ge.s32.totalorder %s15_s15, 4  }
 0x117   :  { %14 = sbr.rel (!%p12_p5) target bundleno = 1 (0x1), region = 112 }

</bundles_post_ra>
